<compile_context>
chip_gen: v7x
topology: tpu7x:2x2x1
jax: 0.10.0
libtpu: 0.0.40
codegen_flags: <defaults>
</compile_context>

<pallas_src>
import functools

import jax
import jax.numpy as jnp
import numpy as np
from jax import lax
from jax.experimental import pallas as pl
from jax.experimental.pallas import tpu as pltpu


def _embt_kernel(zq_ref, wsum_ref, cnt_ref, out_ref, *,
                 n_layers, sp_t1, inv_t2, sp_gamma):
    """EM iterations for one block of tasks.

    zq_ref  : (T_BLK, n_query, d)       raw (unscaled) query features
    wsum_ref: (T_BLK, n_ways,  d)       one_hot^T @ (softplus(t1) * Z_support)
    cnt_ref : (T_BLK, n_ways,  1)       per-class support counts
    out_ref : (T_BLK, n_ways,  n_query) U^T (lane-dense in n_query)
    """
    zq = zq_ref[...].astype(jnp.float32)      # sp_t1 scaling folded into scalars
    usT_zs = wsum_ref[...]
    us_sum = cnt_ref[...]

    n_query = zq.shape[1]
    a = inv_t2 * sp_t1                        # scales the W @ zq logits

    W = usT_zs * pl.reciprocal(us_sum, approx=False)   # init_w prototypes
    V = jnp.ones_like(us_sum)                          # (T, n_ways, 1)

    def softmax_step(W, V):
        # lg[t, k, q] = W[t, k, :] . zq[t, q, :]
        lg = lax.dot_general(W, zq, (((2,), (2,)), ((0,), (0,))),
                             preferred_element_type=jnp.float32)
        bias = inv_t2 * (sp_gamma * V
                         - 0.5 * jnp.sum(W * W, axis=2, keepdims=True))
        sc = a * lg + bias
        # NOTE: the reference also subtracts 0.5*||sp_t1*zq||^2, which is
        # constant across the class axis -> dropped by softmax shift
        # invariance.  Only valid because this softmax runs over classes
        # (axis=1 of sc); do not reuse this helper for raw logits.
        sc = sc - jnp.max(sc, axis=1, keepdims=True)
        e = jnp.exp(sc)
        inv = pl.reciprocal(jnp.sum(e, axis=1, keepdims=True), approx=False)
        return e * inv                                   # U^T (T, K, Q)

    def body(_, carry):
        W, V = carry
        Ut = softmax_step(W, V)
        u_sum = jnp.sum(Ut, axis=2, keepdims=True)       # (T, n_ways, 1)
        V_new = jnp.log(u_sum * (1.0 / n_query) + 1e-6) + 1.0
        num = sp_t1 * lax.dot_general(Ut, zq, (((2,), (1,)), ((0,), (0,))),
                                      preferred_element_type=jnp.float32)
        num = num + usT_zs                               # (T, n_ways, d)
        W_new = num * pl.reciprocal(u_sum + us_sum, approx=False)
        return (W_new, V_new)

    # Peel the final iteration: only the last softmax is observable (the last
    # V/W updates of the reference are dead work).
    W, V = lax.fori_loop(0, n_layers - 1, body, (W, V),
                         unroll=min(4, max(1, n_layers - 1)))
    out_ref[...] = softmax_step(W, V).astype(out_ref.dtype)


def _round_up(x, m):
    return ((x + m - 1) // m) * m


def _vmem_bytes_per_task(n_query, n_ways, d, in_itemsize):
    """Rough per-task VMEM footprint, accounting for (8, 128) tile padding."""
    q_l = _round_up(n_query, 128)   # n_query when it sits on lanes
    q_s = _round_up(n_query, 8)     # n_query when it sits on sublanes
    d_l = _round_up(d, 128)
    k_s = _round_up(n_ways, 8)
    f32 = 4
    io = 2 * (q_s * d_l * in_itemsize      # zq block (double-buffered)
              + k_s * d_l * f32            # usT_zs block
              + k_s * 128 * f32            # counts block
              + k_s * q_l * f32)           # output block
    inter = (q_s * d_l * f32               # f32 upcast of zq
             + 3 * k_s * d_l * f32         # W / num temporaries
             + 4 * k_s * q_l * f32         # lg / sc / e / Ut
             + 4 * k_s * 128 * f32)        # V / u_sum / row stats
    return io + inter


def _vmem_budget_bytes():
    """VMEM we allow the kernel to use, derived from the actual device."""
    try:
        cap = int(pltpu.get_tpu_info().vmem_capacity_bytes)
    except Exception:                      # conservative if the query fails
        cap = 64 * 1024 * 1024             # v7x per-TensorCore VMEM
    # Leave headroom for compiler scratch; never ask for more than ~96 MiB.
    return max(16 * 1024 * 1024,
               min(cap - 24 * 1024 * 1024, 96 * 1024 * 1024))


def _choose_task_block(n_task, requested, per_task_bytes, budget_bytes):
    t = max(1, min(requested, n_task,
                   budget_bytes // max(per_task_bytes, 1)))
    # v7x shards the (parallel) grid axis over its 2 TensorCores: make sure
    # there are at least 2 grid steps.  Harmless on single-TC v5e/v6e.
    if n_task > 1 and pl.cdiv(n_task, t) < 2:
        t = pl.cdiv(n_task, 2)
    return int(t)


def u_paddle_embt_forward(z_support, y_support, z_query, *, n_ways, n_layers,
                          t1=1.0, t2=1.0, gamma=1.0, task_block=32,
                          return_transposed=False):
    """JAX/Pallas equivalent of U_Paddle_EMBT.forward (diff_gamma_layers=False).

    return_transposed=True returns U^T of shape (n_task, n_ways, n_query) and
    skips the HBM transpose back to the PyTorch (n_task, n_query, n_ways)
    layout (saves 2x|U| of HBM traffic if the consumer can take that layout).
    """
    n_task, shot, d = z_support.shape
    n_query = z_query.shape[1]

    # t1/t2/gamma are compile-time Python floats on this call path: bake the
    # derived scalars (computed in f32, matching the reference) into the kernel.
    sp_t1 = float(jax.nn.softplus(jnp.float32(t1)))
    inv_t2 = float(1.0 / (jax.nn.softplus(jnp.float32(t2)) + 1.0))
    sp_gamma = float(jax.nn.softplus(jnp.float32(gamma)))

    # Hoist the layer-invariant support statistics to plain XLA: the kernel
    # only ever streams Z_query.
    us_t = jax.nn.one_hot(y_support, n_ways, dtype=jnp.float32, axis=1)  # (T,K,S)
    zs = z_support.astype(jnp.float32) * sp_t1
    usT_zs = jnp.einsum('tks,tsd->tkd', us_t, zs)                        # (T,K,d)
    us_sum = jnp.sum(us_t, axis=2, keepdims=True)                        # (T,K,1)

    # Z_query is streamed in its native dtype (pass bf16 on HBM-bound v5e/v6e
    # to halve the dominant DMA); the kernel upcasts to f32 at first use.
    in_itemsize = jnp.dtype(z_query.dtype).itemsize
    budget = _vmem_budget_bytes()
    per_task = _vmem_bytes_per_task(n_query, n_ways, d, in_itemsize)
    t_blk = _choose_task_block(n_task, task_block, per_task, budget)

    # Zero-pad the task axis to a multiple of the block.  Padded tasks get
    # us_sum=1 so everything stays finite; their rows are sliced off below.
    n_pad = (-n_task) % t_blk
    zq_in = z_query
    if n_pad:
        zq_in = jnp.pad(zq_in, ((0, n_pad), (0, 0), (0, 0)))
        usT_zs = jnp.pad(usT_zs, ((0, n_pad), (0, 0), (0, 0)))
        us_sum = jnp.pad(us_sum, ((0, n_pad), (0, 0), (0, 0)),
                         constant_values=1.0)
    n_task_p = n_task + n_pad

    kernel = functools.partial(_embt_kernel, n_layers=n_layers, sp_t1=sp_t1,
                               inv_t2=inv_t2, sp_gamma=sp_gamma)

    out_t = pl.pallas_call(
        kernel,
        out_shape=jax.ShapeDtypeStruct((n_task_p, n_ways, n_query), jnp.float32),
        grid=(n_task_p // t_blk,),
        in_specs=[
            pl.BlockSpec((t_blk, n_query, d), lambda t: (t, 0, 0)),   # Z_query
            pl.BlockSpec((t_blk, n_ways, d), lambda t: (t, 0, 0)),    # usT_zs
            pl.BlockSpec((t_blk, n_ways, 1), lambda t: (t, 0, 0)),    # counts
        ],
        out_specs=pl.BlockSpec((t_blk, n_ways, n_query), lambda t: (t, 0, 0)),
        compiler_params=pltpu.CompilerParams(
            dimension_semantics=("parallel",),
            vmem_limit_bytes=budget),
    )(zq_in, usT_zs, us_sum)

    if n_pad:
        out_t = out_t[:n_task]
    if return_transposed:
        return out_t                        # (n_task, n_ways, n_query)
    return jnp.swapaxes(out_t, 1, 2)        # PyTorch layout (n_task, n_query, n_ways)


def _reference_forward(z_support, y_support, z_query, *, n_ways, n_layers,
                       t1=1.0, t2=1.0, gamma=1.0):
    """Pure-JAX reference mirroring the PyTorch forward exactly."""
    sp = jax.nn.softplus
    zs = z_support.astype(jnp.float32) * sp(jnp.float32(t1))
    zq = z_query.astype(jnp.float32) * sp(jnp.float32(t1))
    us = jax.nn.one_hot(y_support, n_ways, dtype=jnp.float32)
    counts = us.sum(1)[..., None]
    W = jnp.einsum('bsk,bsd->bkd', us, zs) / counts
    V = jnp.ones((zs.shape[0], n_ways), jnp.float32)
    nq = zq.shape[1]
    inv_t2 = 1.0 / (sp(jnp.float32(t2)) + 1.0)
    sp_g = sp(jnp.float32(gamma))
    U = None
    for _ in range(n_layers):
        logits = (jnp.einsum('bqd,bkd->bqk', zq, W)
                  - 0.5 * jnp.sum(W ** 2, -1)[:, None, :]
                  - 0.5 * jnp.sum(zq ** 2, -1)[:, :, None])
        U = jax.nn.softmax(inv_t2 * (logits + sp_g * V[:, None, :]), axis=2)
        V = jnp.log(U.sum(1) / nq + 1e-6) + 1.0
        num = (jnp.einsum('bqk,bqd->bkd', U, zq)
               + jnp.einsum('bsk,bsd->bkd', us, zs))
        den = U.sum(1) + us.sum(1)
        W = num / den[..., None]
    return U


if __name__ == "__main__":
    key = jax.random.PRNGKey(0)
    n_task, n_ways, shot_per_class, n_query, d = 2, 4, 2, 16, 32
    shot = n_ways * shot_per_class
    n_layers = 5

    k1, k2 = jax.random.split(key)
    z_support = jax.random.normal(k1, (n_task, shot, d), dtype=jnp.float32)
    z_query = jax.random.normal(k2, (n_task, n_query, d), dtype=jnp.float32)
    # labels: each class appears shot_per_class times per task
    y_support = jnp.tile(jnp.arange(n_ways, dtype=jnp.int32),
                         (n_task, shot_per_class))

    out = u_paddle_embt_forward(z_support, y_support, z_query,
                                n_ways=n_ways, n_layers=n_layers,
                                t1=1.0, t2=1.0, gamma=1.0)
    out = jax.block_until_ready(out)

    ref = _reference_forward(z_support, y_support, z_query,
                             n_ways=n_ways, n_layers=n_layers,
                             t1=1.0, t2=1.0, gamma=1.0)
    # Tolerance relaxed slightly vs 1e-5: dropping the class-constant ||zq||^2
    # shift, folding sp_t1 into the logit scale and the reciprocal-multiply
    # denominators change f32 rounding order, not the math.
    np.testing.assert_allclose(np.asarray(out), np.asarray(ref),
                               rtol=2e-4, atol=1e-4)

    print("KERNEL_OK")
</pallas_src>

<mosaic_0001>
module attributes {stable_mosaic.version = 11 : i64} {
  func.func @_embt_kernel(%arg0: i32, %arg1: memref<1x16x32xf32, #tpu.memory_space<vmem>>, %arg2: memref<1x4x32xf32, #tpu.memory_space<vmem>>, %arg3: memref<1x4x1xf32, #tpu.memory_space<vmem>>, %arg4: memref<1x4x16xf32, #tpu.memory_space<vmem>>) attributes {dimension_semantics = [#tpu.dimension_semantics<parallel>], iteration_bounds = array<i64: 2>, scalar_prefetch = 0 : i64, scratch_operands = 0 : i64, tpu.core_type = #tpu.core_type<tc>, window_params = [{transform_indices = @transform_0, window_bounds = array<i64: 1, 16, 32>}, {transform_indices = @transform_1, window_bounds = array<i64: 1, 4, 32>}, {transform_indices = @transform_2, window_bounds = array<i64: 1, 4, 1>}, {transform_indices = @transform_3, window_bounds = array<i64: 1, 4, 16>}]} {
    %c0 = arith.constant 0 : index
    %c0_0 = arith.constant 0 : index
    %c0_1 = arith.constant 0 : index
    %0 = vector.load %arg1[%c0, %c0_0, %c0_1] : memref<1x16x32xf32, #tpu.memory_space<vmem>>, vector<1x16x32xf32>
    %c0_2 = arith.constant 0 : index
    %c0_3 = arith.constant 0 : index
    %c0_4 = arith.constant 0 : index
    %1 = vector.load %arg2[%c0_2, %c0_3, %c0_4] : memref<1x4x32xf32, #tpu.memory_space<vmem>>, vector<1x4x32xf32>
    %c0_5 = arith.constant 0 : index
    %c0_6 = arith.constant 0 : index
    %c0_7 = arith.constant 0 : index
    %2 = vector.load %arg3[%c0_5, %c0_6, %c0_7] : memref<1x4x1xf32, #tpu.memory_space<vmem>>, vector<1x4x1xf32>
    %3 = tpu.reciprocal %2 : vector<1x4x1xf32> -> vector<1x4x1xf32>
    %4 = vector.broadcast %3 : vector<1x4x1xf32> to vector<1x4x32xf32>
    %5 = arith.mulf %1, %4 : vector<1x4x32xf32>
    %cst = arith.constant 1.000000e+00 : f32
    %6 = vector.broadcast %cst : f32 to vector<1x4x1xf32>
    %c0_i32 = arith.constant 0 : i32
    %cst_8 = arith.constant dense<0.000000e+00> : vector<1x4x16xf32>
    %7 = tpu.matmul %5, %0, %cst_8 {dimension_numbers = #tpu.dot_dimension_numbers<[2], [2], [1], [1], [0, 0, 0, 1, 1, 1], [0], [0]>} : vector<1x4x32xf32>, vector<1x16x32xf32>, vector<1x4x16xf32> -> vector<1x4x16xf32>
    %cst_9 = arith.constant 1.31326175 : f32
    %8 = vector.broadcast %cst_9 : f32 to vector<1x4x1xf32>
    %9 = arith.mulf %8, %6 : vector<1x4x1xf32>
    %10 = arith.mulf %5, %5 : vector<1x4x32xf32>
    %cst_10 = arith.constant dense<0.000000e+00> : vector<1x4xf32>
    %11 = vector.multi_reduction <add>, %10, %cst_10 [2] : vector<1x4x32xf32> to vector<1x4xf32>
    %12 = vector.shape_cast %11 : vector<1x4xf32> to vector<1x4x1xf32>
    %cst_11 = arith.constant 5.000000e-01 : f32
    %13 = vector.broadcast %cst_11 : f32 to vector<1x4x1xf32>
    %14 = arith.mulf %13, %12 : vector<1x4x1xf32>
    %15 = arith.subf %9, %14 : vector<1x4x1xf32>
    %cst_12 = arith.constant 0.432290047 : f32
    %16 = vector.broadcast %cst_12 : f32 to vector<1x4x1xf32>
    %17 = arith.mulf %16, %15 : vector<1x4x1xf32>
    %cst_13 = arith.constant 5.677100e-01 : f32
    %18 = vector.broadcast %cst_13 : f32 to vector<1x4x16xf32>
    %19 = arith.mulf %18, %7 : vector<1x4x16xf32>
    %20 = vector.broadcast %17 : vector<1x4x1xf32> to vector<1x4x16xf32>
    %21 = arith.addf %19, %20 : vector<1x4x16xf32>
    %cst_14 = arith.constant dense<0xFF800000> : vector<1x16xf32>
    %22 = vector.multi_reduction <maximumf>, %21, %cst_14 [1] : vector<1x4x16xf32> to vector<1x16xf32>
    %23 = vector.shape_cast %22 : vector<1x16xf32> to vector<1x1x16xf32>
    %24 = vector.broadcast %23 : vector<1x1x16xf32> to vector<1x4x16xf32>
    %25 = arith.subf %21, %24 : vector<1x4x16xf32>
    %26 = math.exp %25 : vector<1x4x16xf32>
    %cst_15 = arith.constant dense<0.000000e+00> : vector<1x16xf32>
    %27 = vector.multi_reduction <add>, %26, %cst_15 [1] : vector<1x4x16xf32> to vector<1x16xf32>
    %28 = vector.shape_cast %27 : vector<1x16xf32> to vector<1x1x16xf32>
    %29 = tpu.reciprocal %28 : vector<1x1x16xf32> -> vector<1x1x16xf32>
    %30 = vector.broadcast %29 : vector<1x1x16xf32> to vector<1x4x16xf32>
    %31 = arith.mulf %26, %30 : vector<1x4x16xf32>
    %cst_16 = arith.constant dense<0.000000e+00> : vector<1x4xf32>
    %32 = vector.multi_reduction <add>, %31, %cst_16 [2] : vector<1x4x16xf32> to vector<1x4xf32>
    %33 = vector.shape_cast %32 : vector<1x4xf32> to vector<1x4x1xf32>
    %cst_17 = arith.constant 6.250000e-02 : f32
    %34 = vector.broadcast %cst_17 : f32 to vector<1x4x1xf32>
    %35 = arith.mulf %33, %34 : vector<1x4x1xf32>
    %cst_18 = arith.constant 9.99999997E-7 : f32
    %36 = vector.broadcast %cst_18 : f32 to vector<1x4x1xf32>
    %37 = arith.addf %35, %36 : vector<1x4x1xf32>
    %38 = math.log %37 : vector<1x4x1xf32>
    %cst_19 = arith.constant 1.000000e+00 : f32
    %39 = vector.broadcast %cst_19 : f32 to vector<1x4x1xf32>
    %40 = arith.addf %38, %39 : vector<1x4x1xf32>
    %cst_20 = arith.constant dense<0.000000e+00> : vector<1x4x32xf32>
    %41 = tpu.matmul %31, %0, %cst_20 {dimension_numbers = #tpu.dot_dimension_numbers<[2], [1], [1], [2], [0, 0, 0, 1, 1, 2], [0], [0]>} : vector<1x4x16xf32>, vector<1x16x32xf32>, vector<1x4x32xf32> -> vector<1x4x32xf32>
    %cst_21 = arith.constant 1.31326175 : f32
    %42 = vector.broadcast %cst_21 : f32 to vector<1x4x32xf32>
    %43 = arith.mulf %42, %41 : vector<1x4x32xf32>
    %44 = arith.addf %43, %1 : vector<1x4x32xf32>
    %45 = arith.addf %33, %2 : vector<1x4x1xf32>
    %46 = tpu.reciprocal %45 : vector<1x4x1xf32> -> vector<1x4x1xf32>
    %47 = vector.broadcast %46 : vector<1x4x1xf32> to vector<1x4x32xf32>
    %48 = arith.mulf %44, %47 : vector<1x4x32xf32>
    %c1_i32 = arith.constant 1 : i32
    %cst_22 = arith.constant dense<0.000000e+00> : vector<1x4x16xf32>
    %49 = tpu.matmul %48, %0, %cst_22 {dimension_numbers = #tpu.dot_dimension_numbers<[2], [2], [1], [1], [0, 0, 0, 1, 1, 1], [0], [0]>} : vector<1x4x32xf32>, vector<1x16x32xf32>, vector<1x4x16xf32> -> vector<1x4x16xf32>
    %cst_23 = arith.constant 1.31326175 : f32
    %50 = vector.broadcast %cst_23 : f32 to vector<1x4x1xf32>
    %51 = arith.mulf %50, %40 : vector<1x4x1xf32>
    %52 = arith.mulf %48, %48 : vector<1x4x32xf32>
    %cst_24 = arith.constant dense<0.000000e+00> : vector<1x4xf32>
    %53 = vector.multi_reduction <add>, %52, %cst_24 [2] : vector<1x4x32xf32> to vector<1x4xf32>
    %54 = vector.shape_cast %53 : vector<1x4xf32> to vector<1x4x1xf32>
    %cst_25 = arith.constant 5.000000e-01 : f32
    %55 = vector.broadcast %cst_25 : f32 to vector<1x4x1xf32>
    %56 = arith.mulf %55, %54 : vector<1x4x1xf32>
    %57 = arith.subf %51, %56 : vector<1x4x1xf32>
    %cst_26 = arith.constant 0.432290047 : f32
    %58 = vector.broadcast %cst_26 : f32 to vector<1x4x1xf32>
    %59 = arith.mulf %58, %57 : vector<1x4x1xf32>
    %cst_27 = arith.constant 5.677100e-01 : f32
    %60 = vector.broadcast %cst_27 : f32 to vector<1x4x16xf32>
    %61 = arith.mulf %60, %49 : vector<1x4x16xf32>
    %62 = vector.broadcast %59 : vector<1x4x1xf32> to vector<1x4x16xf32>
    %63 = arith.addf %61, %62 : vector<1x4x16xf32>
    %cst_28 = arith.constant dense<0xFF800000> : vector<1x16xf32>
    %64 = vector.multi_reduction <maximumf>, %63, %cst_28 [1] : vector<1x4x16xf32> to vector<1x16xf32>
    %65 = vector.shape_cast %64 : vector<1x16xf32> to vector<1x1x16xf32>
    %66 = vector.broadcast %65 : vector<1x1x16xf32> to vector<1x4x16xf32>
    %67 = arith.subf %63, %66 : vector<1x4x16xf32>
    %68 = math.exp %67 : vector<1x4x16xf32>
    %cst_29 = arith.constant dense<0.000000e+00> : vector<1x16xf32>
    %69 = vector.multi_reduction <add>, %68, %cst_29 [1] : vector<1x4x16xf32> to vector<1x16xf32>
    %70 = vector.shape_cast %69 : vector<1x16xf32> to vector<1x1x16xf32>
    %71 = tpu.reciprocal %70 : vector<1x1x16xf32> -> vector<1x1x16xf32>
    %72 = vector.broadcast %71 : vector<1x1x16xf32> to vector<1x4x16xf32>
    %73 = arith.mulf %68, %72 : vector<1x4x16xf32>
    %cst_30 = arith.constant dense<0.000000e+00> : vector<1x4xf32>
    %74 = vector.multi_reduction <add>, %73, %cst_30 [2] : vector<1x4x16xf32> to vector<1x4xf32>
    %75 = vector.shape_cast %74 : vector<1x4xf32> to vector<1x4x1xf32>
    %cst_31 = arith.constant 6.250000e-02 : f32
    %76 = vector.broadcast %cst_31 : f32 to vector<1x4x1xf32>
    %77 = arith.mulf %75, %76 : vector<1x4x1xf32>
    %cst_32 = arith.constant 9.99999997E-7 : f32
    %78 = vector.broadcast %cst_32 : f32 to vector<1x4x1xf32>
    %79 = arith.addf %77, %78 : vector<1x4x1xf32>
    %80 = math.log %79 : vector<1x4x1xf32>
    %cst_33 = arith.constant 1.000000e+00 : f32
    %81 = vector.broadcast %cst_33 : f32 to vector<1x4x1xf32>
    %82 = arith.addf %80, %81 : vector<1x4x1xf32>
    %cst_34 = arith.constant dense<0.000000e+00> : vector<1x4x32xf32>
    %83 = tpu.matmul %73, %0, %cst_34 {dimension_numbers = #tpu.dot_dimension_numbers<[2], [1], [1], [2], [0, 0, 0, 1, 1, 2], [0], [0]>} : vector<1x4x16xf32>, vector<1x16x32xf32>, vector<1x4x32xf32> -> vector<1x4x32xf32>
    %cst_35 = arith.constant 1.31326175 : f32
    %84 = vector.broadcast %cst_35 : f32 to vector<1x4x32xf32>
    %85 = arith.mulf %84, %83 : vector<1x4x32xf32>
    %86 = arith.addf %85, %1 : vector<1x4x32xf32>
    %87 = arith.addf %75, %2 : vector<1x4x1xf32>
    %88 = tpu.reciprocal %87 : vector<1x4x1xf32> -> vector<1x4x1xf32>
    %89 = vector.broadcast %88 : vector<1x4x1xf32> to vector<1x4x32xf32>
    %90 = arith.mulf %86, %89 : vector<1x4x32xf32>
    %c2_i32 = arith.constant 2 : i32
    %cst_36 = arith.constant dense<0.000000e+00> : vector<1x4x16xf32>
    %91 = tpu.matmul %90, %0, %cst_36 {dimension_numbers = #tpu.dot_dimension_numbers<[2], [2], [1], [1], [0, 0, 0, 1, 1, 1], [0], [0]>} : vector<1x4x32xf32>, vector<1x16x32xf32>, vector<1x4x16xf32> -> vector<1x4x16xf32>
    %cst_37 = arith.constant 1.31326175 : f32
    %92 = vector.broadcast %cst_37 : f32 to vector<1x4x1xf32>
    %93 = arith.mulf %92, %82 : vector<1x4x1xf32>
    %94 = arith.mulf %90, %90 : vector<1x4x32xf32>
    %cst_38 = arith.constant dense<0.000000e+00> : vector<1x4xf32>
    %95 = vector.multi_reduction <add>, %94, %cst_38 [2] : vector<1x4x32xf32> to vector<1x4xf32>
    %96 = vector.shape_cast %95 : vector<1x4xf32> to vector<1x4x1xf32>
    %cst_39 = arith.constant 5.000000e-01 : f32
    %97 = vector.broadcast %cst_39 : f32 to vector<1x4x1xf32>
    %98 = arith.mulf %97, %96 : vector<1x4x1xf32>
    %99 = arith.subf %93, %98 : vector<1x4x1xf32>
    %cst_40 = arith.constant 0.432290047 : f32
    %100 = vector.broadcast %cst_40 : f32 to vector<1x4x1xf32>
    %101 = arith.mulf %100, %99 : vector<1x4x1xf32>
    %cst_41 = arith.constant 5.677100e-01 : f32
    %102 = vector.broadcast %cst_41 : f32 to vector<1x4x16xf32>
    %103 = arith.mulf %102, %91 : vector<1x4x16xf32>
    %104 = vector.broadcast %101 : vector<1x4x1xf32> to vector<1x4x16xf32>
    %105 = arith.addf %103, %104 : vector<1x4x16xf32>
    %cst_42 = arith.constant dense<0xFF800000> : vector<1x16xf32>
    %106 = vector.multi_reduction <maximumf>, %105, %cst_42 [1] : vector<1x4x16xf32> to vector<1x16xf32>
    %107 = vector.shape_cast %106 : vector<1x16xf32> to vector<1x1x16xf32>
    %108 = vector.broadcast %107 : vector<1x1x16xf32> to vector<1x4x16xf32>
    %109 = arith.subf %105, %108 : vector<1x4x16xf32>
    %110 = math.exp %109 : vector<1x4x16xf32>
    %cst_43 = arith.constant dense<0.000000e+00> : vector<1x16xf32>
    %111 = vector.multi_reduction <add>, %110, %cst_43 [1] : vector<1x4x16xf32> to vector<1x16xf32>
    %112 = vector.shape_cast %111 : vector<1x16xf32> to vector<1x1x16xf32>
    %113 = tpu.reciprocal %112 : vector<1x1x16xf32> -> vector<1x1x16xf32>
    %114 = vector.broadcast %113 : vector<1x1x16xf32> to vector<1x4x16xf32>
    %115 = arith.mulf %110, %114 : vector<1x4x16xf32>
    %cst_44 = arith.constant dense<0.000000e+00> : vector<1x4xf32>
    %116 = vector.multi_reduction <add>, %115, %cst_44 [2] : vector<1x4x16xf32> to vector<1x4xf32>
    %117 = vector.shape_cast %116 : vector<1x4xf32> to vector<1x4x1xf32>
    %cst_45 = arith.constant 6.250000e-02 : f32
    %118 = vector.broadcast %cst_45 : f32 to vector<1x4x1xf32>
    %119 = arith.mulf %117, %118 : vector<1x4x1xf32>
    %cst_46 = arith.constant 9.99999997E-7 : f32
    %120 = vector.broadcast %cst_46 : f32 to vector<1x4x1xf32>
    %121 = arith.addf %119, %120 : vector<1x4x1xf32>
    %122 = math.log %121 : vector<1x4x1xf32>
    %cst_47 = arith.constant 1.000000e+00 : f32
    %123 = vector.broadcast %cst_47 : f32 to vector<1x4x1xf32>
    %124 = arith.addf %122, %123 : vector<1x4x1xf32>
    %cst_48 = arith.constant dense<0.000000e+00> : vector<1x4x32xf32>
    %125 = tpu.matmul %115, %0, %cst_48 {dimension_numbers = #tpu.dot_dimension_numbers<[2], [1], [1], [2], [0, 0, 0, 1, 1, 2], [0], [0]>} : vector<1x4x16xf32>, vector<1x16x32xf32>, vector<1x4x32xf32> -> vector<1x4x32xf32>
    %cst_49 = arith.constant 1.31326175 : f32
    %126 = vector.broadcast %cst_49 : f32 to vector<1x4x32xf32>
    %127 = arith.mulf %126, %125 : vector<1x4x32xf32>
    %128 = arith.addf %127, %1 : vector<1x4x32xf32>
    %129 = arith.addf %117, %2 : vector<1x4x1xf32>
    %130 = tpu.reciprocal %129 : vector<1x4x1xf32> -> vector<1x4x1xf32>
    %131 = vector.broadcast %130 : vector<1x4x1xf32> to vector<1x4x32xf32>
    %132 = arith.mulf %128, %131 : vector<1x4x32xf32>
    %c3_i32 = arith.constant 3 : i32
    %cst_50 = arith.constant dense<0.000000e+00> : vector<1x4x16xf32>
    %133 = tpu.matmul %132, %0, %cst_50 {dimension_numbers = #tpu.dot_dimension_numbers<[2], [2], [1], [1], [0, 0, 0, 1, 1, 1], [0], [0]>} : vector<1x4x32xf32>, vector<1x16x32xf32>, vector<1x4x16xf32> -> vector<1x4x16xf32>
    %cst_51 = arith.constant 1.31326175 : f32
    %134 = vector.broadcast %cst_51 : f32 to vector<1x4x1xf32>
    %135 = arith.mulf %134, %124 : vector<1x4x1xf32>
    %136 = arith.mulf %132, %132 : vector<1x4x32xf32>
    %cst_52 = arith.constant dense<0.000000e+00> : vector<1x4xf32>
    %137 = vector.multi_reduction <add>, %136, %cst_52 [2] : vector<1x4x32xf32> to vector<1x4xf32>
    %138 = vector.shape_cast %137 : vector<1x4xf32> to vector<1x4x1xf32>
    %cst_53 = arith.constant 5.000000e-01 : f32
    %139 = vector.broadcast %cst_53 : f32 to vector<1x4x1xf32>
    %140 = arith.mulf %139, %138 : vector<1x4x1xf32>
    %141 = arith.subf %135, %140 : vector<1x4x1xf32>
    %cst_54 = arith.constant 0.432290047 : f32
    %142 = vector.broadcast %cst_54 : f32 to vector<1x4x1xf32>
    %143 = arith.mulf %142, %141 : vector<1x4x1xf32>
    %cst_55 = arith.constant 5.677100e-01 : f32
    %144 = vector.broadcast %cst_55 : f32 to vector<1x4x16xf32>
    %145 = arith.mulf %144, %133 : vector<1x4x16xf32>
    %146 = vector.broadcast %143 : vector<1x4x1xf32> to vector<1x4x16xf32>
    %147 = arith.addf %145, %146 : vector<1x4x16xf32>
    %cst_56 = arith.constant dense<0xFF800000> : vector<1x16xf32>
    %148 = vector.multi_reduction <maximumf>, %147, %cst_56 [1] : vector<1x4x16xf32> to vector<1x16xf32>
    %149 = vector.shape_cast %148 : vector<1x16xf32> to vector<1x1x16xf32>
    %150 = vector.broadcast %149 : vector<1x1x16xf32> to vector<1x4x16xf32>
    %151 = arith.subf %147, %150 : vector<1x4x16xf32>
    %152 = math.exp %151 : vector<1x4x16xf32>
    %cst_57 = arith.constant dense<0.000000e+00> : vector<1x16xf32>
    %153 = vector.multi_reduction <add>, %152, %cst_57 [1] : vector<1x4x16xf32> to vector<1x16xf32>
    %154 = vector.shape_cast %153 : vector<1x16xf32> to vector<1x1x16xf32>
    %155 = tpu.reciprocal %154 : vector<1x1x16xf32> -> vector<1x1x16xf32>
    %156 = vector.broadcast %155 : vector<1x1x16xf32> to vector<1x4x16xf32>
    %157 = arith.mulf %152, %156 : vector<1x4x16xf32>
    %cst_58 = arith.constant dense<0.000000e+00> : vector<1x4xf32>
    %158 = vector.multi_reduction <add>, %157, %cst_58 [2] : vector<1x4x16xf32> to vector<1x4xf32>
    %159 = vector.shape_cast %158 : vector<1x4xf32> to vector<1x4x1xf32>
    %cst_59 = arith.constant 6.250000e-02 : f32
    %160 = vector.broadcast %cst_59 : f32 to vector<1x4x1xf32>
    %161 = arith.mulf %159, %160 : vector<1x4x1xf32>
    %cst_60 = arith.constant 9.99999997E-7 : f32
    %162 = vector.broadcast %cst_60 : f32 to vector<1x4x1xf32>
    %163 = arith.addf %161, %162 : vector<1x4x1xf32>
    %164 = math.log %163 : vector<1x4x1xf32>
    %cst_61 = arith.constant 1.000000e+00 : f32
    %165 = vector.broadcast %cst_61 : f32 to vector<1x4x1xf32>
    %166 = arith.addf %164, %165 : vector<1x4x1xf32>
    %cst_62 = arith.constant dense<0.000000e+00> : vector<1x4x32xf32>
    %167 = tpu.matmul %157, %0, %cst_62 {dimension_numbers = #tpu.dot_dimension_numbers<[2], [1], [1], [2], [0, 0, 0, 1, 1, 2], [0], [0]>} : vector<1x4x16xf32>, vector<1x16x32xf32>, vector<1x4x32xf32> -> vector<1x4x32xf32>
    %cst_63 = arith.constant 1.31326175 : f32
    %168 = vector.broadcast %cst_63 : f32 to vector<1x4x32xf32>
    %169 = arith.mulf %168, %167 : vector<1x4x32xf32>
    %170 = arith.addf %169, %1 : vector<1x4x32xf32>
    %171 = arith.addf %159, %2 : vector<1x4x1xf32>
    %172 = tpu.reciprocal %171 : vector<1x4x1xf32> -> vector<1x4x1xf32>
    %173 = vector.broadcast %172 : vector<1x4x1xf32> to vector<1x4x32xf32>
    %174 = arith.mulf %170, %173 : vector<1x4x32xf32>
    %cst_64 = arith.constant dense<0.000000e+00> : vector<1x4x16xf32>
    %175 = tpu.matmul %174, %0, %cst_64 {dimension_numbers = #tpu.dot_dimension_numbers<[2], [2], [1], [1], [0, 0, 0, 1, 1, 1], [0], [0]>} : vector<1x4x32xf32>, vector<1x16x32xf32>, vector<1x4x16xf32> -> vector<1x4x16xf32>
    %cst_65 = arith.constant 1.31326175 : f32
    %176 = vector.broadcast %cst_65 : f32 to vector<1x4x1xf32>
    %177 = arith.mulf %176, %166 : vector<1x4x1xf32>
    %178 = arith.mulf %174, %174 : vector<1x4x32xf32>
    %cst_66 = arith.constant dense<0.000000e+00> : vector<1x4xf32>
    %179 = vector.multi_reduction <add>, %178, %cst_66 [2] : vector<1x4x32xf32> to vector<1x4xf32>
    %180 = vector.shape_cast %179 : vector<1x4xf32> to vector<1x4x1xf32>
    %cst_67 = arith.constant 5.000000e-01 : f32
    %181 = vector.broadcast %cst_67 : f32 to vector<1x4x1xf32>
    %182 = arith.mulf %181, %180 : vector<1x4x1xf32>
    %183 = arith.subf %177, %182 : vector<1x4x1xf32>
    %cst_68 = arith.constant 0.432290047 : f32
    %184 = vector.broadcast %cst_68 : f32 to vector<1x4x1xf32>
    %185 = arith.mulf %184, %183 : vector<1x4x1xf32>
    %cst_69 = arith.constant 5.677100e-01 : f32
    %186 = vector.broadcast %cst_69 : f32 to vector<1x4x16xf32>
    %187 = arith.mulf %186, %175 : vector<1x4x16xf32>
    %188 = vector.broadcast %185 : vector<1x4x1xf32> to vector<1x4x16xf32>
    %189 = arith.addf %187, %188 : vector<1x4x16xf32>
    %cst_70 = arith.constant dense<0xFF800000> : vector<1x16xf32>
    %190 = vector.multi_reduction <maximumf>, %189, %cst_70 [1] : vector<1x4x16xf32> to vector<1x16xf32>
    %191 = vector.shape_cast %190 : vector<1x16xf32> to vector<1x1x16xf32>
    %192 = vector.broadcast %191 : vector<1x1x16xf32> to vector<1x4x16xf32>
    %193 = arith.subf %189, %192 : vector<1x4x16xf32>
    %194 = math.exp %193 : vector<1x4x16xf32>
    %cst_71 = arith.constant dense<0.000000e+00> : vector<1x16xf32>
    %195 = vector.multi_reduction <add>, %194, %cst_71 [1] : vector<1x4x16xf32> to vector<1x16xf32>
    %196 = vector.shape_cast %195 : vector<1x16xf32> to vector<1x1x16xf32>
    %197 = tpu.reciprocal %196 : vector<1x1x16xf32> -> vector<1x1x16xf32>
    %198 = vector.broadcast %197 : vector<1x1x16xf32> to vector<1x4x16xf32>
    %199 = arith.mulf %194, %198 : vector<1x4x16xf32>
    %c0_72 = arith.constant 0 : index
    %c0_73 = arith.constant 0 : index
    %c0_74 = arith.constant 0 : index
    %200 = vector.load %arg4[%c0_72, %c0_73, %c0_74] : memref<1x4x16xf32, #tpu.memory_space<vmem>>, vector<1x4x16xf32>
    tpu.vector_store %arg4[%c0_72, %c0_73, %c0_74], %199 {strides = array<i32>} : memref<1x4x16xf32, #tpu.memory_space<vmem>>, vector<1x4x16xf32>,
    return
  }
  func.func @transform_0(%arg0: i32) -> (i32, i32, i32) {
    %c0_i32 = arith.constant 0 : i32
    %c0_i32_0 = arith.constant 0 : i32
    %c0_i32_1 = arith.constant 0 : i32
    return %arg0, %c0_i32, %c0_i32_0 : i32, i32, i32
  }
  func.func @transform_1(%arg0: i32) -> (i32, i32, i32) {
    %c0_i32 = arith.constant 0 : i32
    %c0_i32_0 = arith.constant 0 : i32
    %c0_i32_1 = arith.constant 0 : i32
    return %arg0, %c0_i32, %c0_i32_0 : i32, i32, i32
  }
  func.func @transform_2(%arg0: i32) -> (i32, i32, i32) {
    %c0_i32 = arith.constant 0 : i32
    %c0_i32_0 = arith.constant 0 : i32
    %c0_i32_1 = arith.constant 0 : i32
    return %arg0, %c0_i32, %c0_i32_0 : i32, i32, i32
  }
  func.func @transform_3(%arg0: i32) -> (i32, i32, i32) {
    %c0_i32 = arith.constant 0 : i32
    %c0_i32_0 = arith.constant 0 : i32
    %c0_i32_1 = arith.constant 0 : i32
    return %arg0, %c0_i32, %c0_i32_0 : i32, i32, i32
  }
}

</mosaic_0001>

<bundles_post_ra>
// kernel: tpu_custom_call.1
= control target key start
LH: loop header
LB: loop body
LE: loop exit
PB: predicated region body
PF: predicated region fallthrough
CT: control target
= control target key end

     0   :  { %8 = vsyncpa [#allocation3], 0  ;;  %s1867_s0 = inlined_call_operand.hbm [shape: f32[2,16,32], index: 0, kind: input, shape index: {}]   ;;  %s1868_s1 = inlined_call_operand.vmem [shape: f32[2,4,32], index: 1, kind: input, shape index: {}]   ;;  %s1869_s2 = inlined_call_operand.vmem [shape: f32[2,4,1], index: 2, kind: input, shape index: {}]   ;;  %s1870_s3 = inlined_call_operand.hbm [shape: f32[2,4,16], index: 3, kind: output, shape index: {}]  }
   0x1   :  { %10 = vsyncpa [#allocation3 + $0x1], 0 }
   0x2   :  { %11 = vsyncpa [#allocation4], 0 }
   0x3   :  { %13 = vsyncpa [#allocation4 + $0x1], 0  ;;  %s1601_s12 = smov 0   ;;  %s1603_s13 = smov 0  }
   0x4   :  { %s1605_s14 = smov 0   ;;  %s1607_s15 = smov 0  }
   0x5 LB: > { %s1622_s16 = sadd.s32 4294967295, %s1571_s15   ;;  %s1226_s17 = sadd.s32 4294967294, %s1571_s15   ;;  %s1571_s15 = sphi %s1607_s15, %s1885_s15   ;;  %s1567_s14 = sphi %s1605_s14, %s1884_s14   ;;  %s1563_s13 = sphi %s1603_s13, %s1883_s13   ;;  %s1559_s12 = sphi %s1601_s12, %s1882_s12  }
   0x6   : > { %s1626_s18 = sadd.s32 1, %s1571_s15   ;;  %s26_s19 = sadd.s32 1, %s1567_s14 }
   0x7   : > { %s23_s20 = ssub.s32 %s1571_s15, %s1626_s18  ;;  %p33_p0 = scmp.ne.s32.totalorder %s1567_s14, %s1563_s13 }
   0x8   : > { %p24_p1 = scmp.eq.s32.totalorder %s23_s20, 0  ;;  %p34_p2 = scmp.eq.s32.totalorder %s1571_s15, 0 }
   0x9   : > { %p39_p3 = scmp.ne.s32.totalorder %s1563_s13, %s1559_s12  ;;  %p40_p4 = scmp.eq.s32.totalorder %s1622_s16, 0 }
   0xa   : > { %s1638_s21 = scalar_select %p24_p1, %s1567_s14, %s26_s19  }
   0xb   : > { %p1640_p5 = por %p34_p2, %p33_p0  ;;  %p1644_p6 = por %p40_p4, %p39_p3 }
   0xc   : > { %p115_p7 = scmp.eq.s32.totalorder %s1622_s16, 1  ;;  %p121_p8 = scmp.eq.s32.totalorder %s1226_s17, 1 }
   0xd   : > { %p1395_p10 = scmp.lt.s32.totalorder %s1571_s15, 2  ;;  %s141_s26 = sand.u32 1, %s1567_s14  }
   0xe   : > { %p1651_p11 = por %p115_p7, %p33_p0  ;;  %p1655_p12 = por %p121_p8, %p39_p3 }
   0xf   : > { %s1260_s27 = sshll.u32 %s1571_s15, 8  ;;  %s1229_s28 = sshll.u32 %s141_s26, 4 }
  0x10   : > { %s1874_s24 = scalar_select %p1651_p11, 1, 0 }
  0x11   : > { %s1875_s25 = scalar_select %p1655_p12, 1, 0 }
  0x12   : > { %s1664_s4 = scalar_lea.hbm %s1867_s0, %s1260_s27  ;;  %s145_s5 = scalar_lea.vmem [#allocation2], %s1229_s28 }
  0x13   : > { %s152_s6 = sshll.u32 %s145_s5, 4  ;;  %p1668_p13 = pnand %p1395_p10, %p1640_p5  ;;  %s1672_s6 = int_to_ptr.vmem [resolvable:$true] %s152_s6 }
  0x14   : > { %s1674_s8 = scalar_lea.sflag [#allocation3], %s141_s26  ;;  %s1475_s9 = scalar_lea.hbm %s1664_s4, 256 }
  0x15   : > { %p1476_p0 = scmp.ne.s32.totalorder %s1664_s4, %s1475_s9  ;;  %p1477_p1 = pneg %p1668_p13 }
  0x16   : > { %s1480_s17 = scalar_lea.hbm %s1867_s0, 512  ;;  %p1481_p4 = scmp.lt.u32.totalorder %s1664_s4, %s1867_s0 }
  0x17   : > { %p1478_p2 = pnand %p1477_p1, %p1476_p0  ;;  %p1482_p5 = scmp.lt.u32.totalorder %s1480_s17, %s1475_s9 }
  0x18   : > { %p1484_p8 = scmp.lt.u32.totalorder %s1475_s9, %s1664_s4 }
  0x19   : > { %p1479_p3 = pneg %p1478_p2  ;;  %p1483_p7 = por %p1482_p5, %p1481_p4 }
  0x1b   : > { %p1485_p10 = por %p1484_p8, %p1483_p7 }
  0x1d   : > { %p1486_p9 = pnand %p1485_p10, %p1479_p3 }
  0x1f   : > { %1489 = shalt.err (!%p1486_p9)
}
  0x20   : > { %s1490_s22 = scalar_lea.vmem %s1672_s6, 256  ;;  %s1573_s26 = smov [#allocation2]  }
  0x21   : > { %p1491_p0 = scmp.ne.s32.totalorder %s1672_s6, %s1490_s22  ;;  %s1495_s27 = sshll.u32 %s1573_s26, 4  ;;  %s1496_s27 = int_to_ptr.vmem [resolvable:$false] %s1495_s27 }
  0x22   : > { %s1497_s28 = scalar_lea.vmem %s1496_s27, 512  ;;  %p1498_p11 = scmp.lt.s32.totalorder %s1672_s6, %s1496_s27 }
  0x23   : > { %p1493_p2 = pnand %p1491_p0, %p1477_p1  ;;  %p1499_p4 = scmp.lt.s32.totalorder %s1497_s28, %s1490_s22 }
  0x25   : > { %p1494_p12 = pneg %p1493_p2  ;;  %p1500_p5 = por %p1499_p4, %p1498_p11 }
  0x27   : > { %p1501_p7 = pnand %p1500_p5, %p1494_p12 }
  0x29   : > { %1504 = shalt.err (!%p1501_p7)
}
  0x2a   : > { %s1574_s29 = smov 128   ;;  %s1575_s30 = smov 8  }
  0x2b   : > { %1390 = dma.hbm_to_vmem [thread:$0]  (!%p1668_p13), %s1664_s4, 256, %s1672_s6, %s1674_s8, %s1574_s29, %s1574_s29, %s1575_s30  }
  0x2c   : > { %p1232_p9 = scmp.ge.s32.totalorder %s1571_s15, 1  ;;  %p174_p1 = scmp.lt.s32.totalorder %s1571_s15, 3 }
  0x2e   : > { %p175_p3 = pnand %p1232_p9, %p174_p1 }
  0x2f   : > { %s1705_s5 = sand.u32 (!%p175_p3), 1, %s1563_s13  }
  0x30   : > { %178 = sbr.rel (%p175_p3) target bundleno = 2712 (0xa98), region = 32  ;;  %s1233_s9 = sshll.u32 (!%p175_p3), %s1705_s5, 4 }
  0x31   : > { %s181_s10 = scalar_lea.sflag (!%p175_p3), [#allocation3], %s1705_s5  ;;  %s184_s11 = scalar_lea.vmem (!%p175_p3), [#allocation2], %s1233_s9 }
  0x37   : > { %1550 = dma.done.wait (%p1644_p6), %s181_s10, 256  }
  0x38   : > { %1552 = vsyncadd (%p1644_p6), %s181_s10, 4294967040  ;;  %p215_p11 = scmp.lt.s32.totalorder %s1622_s16, 1  ;;  %v1576_v0 = vmov 0   ;;  %v1577_v1 = vmov 0.0|0.0   ;;  %vm234_vm0 = vcmask 261120   ;;  %v223_v4 = vld [vmem:[%s184_s11] sm:$0xff] }
  0x39   : > { %1435 = vset.pattern.permute.xlu0 %v1576_v0  ;;  %1351 = vmatprep.subr.bf16.mxu0 %v1577_v1  ;;  %vm1722_vm1 = vmpackc.low %vm234_vm0, %vm234_vm0  ;;  %v224_v5 = vld [vmem:[%s184_s11 + $0x8] sm:$0xff]  ;;  %vm1578_vm2 = vmmov 0   ;;  %v1579_v8 = vmov 0.0   ;;  %vm315_vm3 = vcmask 257024   ;;  %vm324_vm4 = vcmask 125952   ;;  %s1234_s22 = sshll.u32 %s1705_s5, 2 }
  0x3a   : > { %s216_s4 = scalar_select %p215_p11, %s1622_s16, 1  ;;  %1355 = vmatprep.subr.bf16.mxu1 %v1577_v1  ;;  %1436 = vset.pattern.permute.xlu1 %v1576_v0  ;;  %v1729_v6 = vpack.c.bf16 %v224_v5, %v223_v4  ;;  %vm352_vm5 = vcmask 130048  }
  0x3b   : > { %1292 = vmatprep.mubr.msk.f32.mxu0 %vm1578_vm2, %v1579_v8  ;;  %1299 = vmatprep.mubr.msk.f32.mxu1 %vm1578_vm2, %v1579_v8  ;;  %s1257_s26 = sshll.u32 %s1622_s16, 6  ;;  %s214_s27 = scalar_lea.vmem [#allocation5], %s1234_s22 }
  0x3c   : > { %s1235_s6 = sshll.u32 %s216_s4, 2  ;;  %1354 = vmatpush3.bf16.xpose.msk.msra.mxu0 %vm1722_vm1, %v1729_v6  ;;  %1357 = vmatpush3.bf16.msra.mxu1 %v1729_v6  ;;  %s1132_s28 = sshll.u32 %s214_s27, 4  ;;  %s1824_s28 = int_to_ptr.vmem [resolvable:$true] %s1132_s28 }
  0x3d   : > { %s222_s17 = scalar_lea.vmem %s1869_s2, %s1235_s6  ;;  %1358 = vmatprep.subr.bf16.mxu1 %v1577_v1  ;;  %1365 = vmatprep.subr.bf16.mxu0 %v1577_v1  ;;  %s218_s20 = scalar_lea.vmem %s1868_s1, %s1235_s6 }
  0x3e   : > { %v1726_v3 = vld [vmem:[%s222_s17] sm:$0xf]  ;;  %s1822_s9 = scalar_lea.hbm %s1870_s3, %s1257_s26  ;;  %s1119_s10 = scalar_lea.sflag [#allocation4], %s1705_s5 }
  0x3f   : > { %1437 = vrcp.f32 %v1726_v3  ;;  %v1744_v9 = vld [vmem:[%s218_s20] sm:$0xf]  ;;  %s1505_s11 = scalar_lea.vmem %s1824_s28, 64  ;;  %p1879_p12 = scmp.ne.s32.totalorder %s1874_s24, 0 }
  0x40   : > { %p1506_p6 = scmp.ne.s32.totalorder %s1824_s28, %s1505_s11  ;;  %s1580_s16 = smov [#allocation5]  }
  0x41   : > { %s1509_s4 = sshll.u32 %s1580_s16, 4  ;;  %s1510_s4 = int_to_ptr.vmem [resolvable:$false] %s1509_s4 }
  0x42   : > { %p1507_p13 = pnand %p1506_p6, %p1879_p12  ;;  %s1511_s6 = scalar_lea.vmem %s1510_s4, 128 }
  0x43   : > { %p1512_p10 = scmp.lt.s32.totalorder %s1824_s28, %s1510_s4  ;;  %p1513_p0 = scmp.lt.s32.totalorder %s1511_s6, %s1505_s11 }
  0x44   : > { %p1508_p8 = pneg %p1507_p13 }
  0x45   : > { %p1514_p2 = por %p1513_p0, %p1512_p10 }
  0x47   : > { %p1515_p4 = pnand %p1514_p2, %p1508_p8 }
  0x49   : > { %v1438_v7 = vpop.eup %1437 }
  0x4a   : > { %230 = vperm.xlu0 %1435, %v1438_v7  }
  0xc9   : > { %v231_v10 = vpop.permute.xlu0 %230 }
  0xca   : > { %v233_v11 = vmul.f32 %v231_v10, %v1744_v9 }
  0xcc   : > { %1293 = vmatmul.mubr.msk.f32.vlgmr.msra.gmra.mrb[0].mxu0 %vm234_vm0, %v233_v11  ;;  %v314_v12 = vmul.f32 %v233_v11, %v233_v11 }
  0xcd   : > { %1368 = vmatpush3.bf16.xpose.msk.msra.mxu0 %vm1722_vm1, %v1729_v6  ;;  %1320 = vmatprep.mubr.msk.f32.mxu0 %vm1578_vm2, %v1579_v8 }
  0xce   : > { %v316_v13 = vsel %vm315_vm3, %v314_v12, 0.0  ;;  %1376 = vmatprep.subr.bf16.mxu0 %v1577_v1 }
  0xcf   : > { %317 = vadd.xlane.f32.xlu0 %v316_v13 }
 0x15c   : > { %v318_v14 = vpop.xlane.xlu0 %317 }
 0x15d   : > { %v319_v15 = vmul.f32 0.5, %v318_v14 }
 0x15f   : > { %v320_v16 = vsub.f32 1.3132617, %v319_v15 }
 0x161   : > { %v321_v18 = vmul.f32 0.43229005, %v320_v16 }
 0x19f   : > { %v310_v17 = vpop.f32.mrb[0].mxu0 }
 0x1a0   : > { %v322_v19 = vmul.f32 0.56771, %v310_v17  ;;  %v1294_v20 = vpop.f32.mrb[1].mxu0 }
 0x1a2   : > { %v323_v21 = vadd.f32 %v322_v19, %v321_v18 }
 0x1a4   : > { %v325_v22 = vsel %vm324_vm4, %v323_v21, -inf }
 0x1a5   : > { %v326_v23 = vrot.slane %v325_v22, 4 }
 0x1a7   : > { %v327_v24 = vmax.f32 %v325_v22, %v326_v23 }
 0x1a9   : > { %v328_v25 = vrot.slane %v327_v24, 2 }
 0x1ab   : > { %v329_v26 = vmax.f32 %v327_v24, %v328_v25 }
 0x1ad   : > { %v330_v27 = vrot.slane %v329_v26, 1 }
 0x1af   : > { %v331_v28 = vmax.f32 %v329_v26, %v330_v27 }
 0x1b1   : > { %v332_v29 = vsub.f32 %v323_v21, %v331_v28 }
 0x1b3   : > { %v333_v30 = vmul.f32 1.442695, %v332_v29 }
 0x1b5   : > { %1439 = vpow2.f32 %v333_v30 }
 0x1bf   : > { %v1440_v31 = vpop.eup %1439 }
 0x1c0   : > { %v335_v32 = vsel %vm324_vm4, %v1440_v31, 0.0 }
 0x1c1   : > { %v336_v33 = vrot.slane %v335_v32, 4 }
 0x1c3   : > { %v337_v34 = vadd.f32 %v336_v33, %v335_v32 }
 0x1c5   : > { %v338_v35 = vrot.slane %v337_v34, 2 }
 0x1c7   : > { %v339_v36 = vadd.f32 %v338_v35, %v337_v34 }
 0x1c9   : > { %v340_v37 = vrot.slane %v339_v36, 1 }
 0x1cb   : > { %v341_v38 = vadd.f32 %v340_v37, %v339_v36 }
 0x1cd   : > { %1441 = vrcp.f32 %v341_v38 }
 0x1d7   : > { %v1442_v39 = vpop.eup %1441 }
 0x1d8   : > { %v343_v40 = vmul.f32 %v1442_v39, %v1440_v31 }
 0x1da   : > { %1300 = vmatmul.mubr.msk.f32.vlgmr.msra.gmra.mrb[0].mxu1 %vm352_vm5, %v343_v40  ;;  %v344_v41 = vsel %vm324_vm4, %v343_v40, 0.0 }
 0x1db   : > { %345 = vadd.xlane.f32.xlu1 %v344_v41  ;;  %1361 = vmatpush3.bf16.xpose.msk.msra.mxu1 %vm1722_vm1, %v1729_v6 }
 0x1dc   : > { %1306 = vmatprep.mubr.msk.f32.mxu1 %vm1578_vm2, %v1579_v8  ;;  %1362 = vmatprep.subr.bf16.mxu1 %v1577_v1 }
 0x268   : > { %v346_v42 = vpop.xlane.xlu1 %345 }
 0x269   : > { %v428_v43 = vadd.f32 %v346_v42, %v1726_v3  ;;  %v347_v53 = vmul.f32 0.0625, %v346_v42 }
 0x26b   : > { %1443 = vrcp.f32 %v428_v43  ;;  %v348_v54 = vadd.f32 1e-06, %v347_v53 }
 0x26d   : > { %1445 = vlog2.f32 %v348_v54 }
 0x275   : > { %v1444_v44 = vpop.eup %1443 }
 0x276   : > { %432 = vperm.xlu1 %1436, %v1444_v44  }
 0x277   : > { %v1446_v55 = vpop.eup %1445 }
 0x278   : > { %v350_v56 = vmul.f32 0.6931472, %v1446_v55 }
 0x27a   : > { %v351_v58 = vadd.f32 1.0, %v350_v56 }
 0x27c   : > { %v509_v60 = vmul.f32 1.3132617, %v351_v58 }
 0x2ad   : > { %v422_v45 = vpop.f32.mrb[0].mxu1 }
 0x2ae   : > { %v1301_v46 = vpop.f32.mrb[1].mxu1  ;;  %v426_v47 = vmul.f32 1.3132617, %v422_v45 }
 0x2b0   : > { %v427_v48 = vadd.f32 %v426_v47, %v1744_v9 }
 0x2f5   : > { %v433_v49 = vpop.permute.xlu1 %432 }
 0x2f6   : > { %v435_v50 = vmul.f32 %v433_v49, %v427_v48 }
 0x2f8   : > { %1307 = vmatmul.mubr.msk.f32.vlgmr.msra.gmra.mrb[2].mxu1 %vm234_vm0, %v435_v50  ;;  %v510_v51 = vmul.f32 %v435_v50, %v435_v50 }
 0x2f9   : > { %1364 = vmatpush3.bf16.msra.mxu1 %v1729_v6  ;;  %1313 = vmatprep.mubr.msk.f32.mxu1 %vm1578_vm2, %v1579_v8 }
 0x2fa   : > { %v511_v52 = vsel %vm315_vm3, %v510_v51, 0.0  ;;  %1369 = vmatprep.subr.bf16.mxu1 %v1577_v1 }
 0x2fb   : > { %512 = vadd.xlane.f32.xlu1 %v511_v52 }
 0x388   : > { %v513_v57 = vpop.xlane.xlu1 %512 }
 0x389   : > { %v514_v59 = vmul.f32 0.5, %v513_v57 }
 0x38b   : > { %v515_v61 = vsub.f32 %v509_v60, %v514_v59 }
 0x38d   : > { %v516_v63 = vmul.f32 0.43229005, %v515_v61 }
 0x3cb   : > { %v505_v62 = vpop.f32.mrb[2].mxu1 }
 0x3cc   : > { %v517_v0 = vmul.f32 0.56771, %v505_v62  ;;  %v1308_v4 = vpop.f32.mrb[3].mxu1 }
 0x3ce   : > { %v518_v5 = vadd.f32 %v517_v0, %v516_v63 }
 0x3d0   : > { %v519_v7 = vsel %vm324_vm4, %v518_v5, -inf }
 0x3d1   : > { %v520_v10 = vrot.slane %v519_v7, 4 }
 0x3d3   : > { %v521_v11 = vmax.f32 %v519_v7, %v520_v10 }
 0x3d5   : > { %v522_v12 = vrot.slane %v521_v11, 2 }
 0x3d7   : > { %v523_v13 = vmax.f32 %v521_v11, %v522_v12 }
 0x3d9   : > { %v524_v14 = vrot.slane %v523_v13, 1 }
 0x3db   : > { %v525_v15 = vmax.f32 %v523_v13, %v524_v14 }
 0x3dd   : > { %v526_v16 = vsub.f32 %v518_v5, %v525_v15 }
 0x3df   : > { %v527_v17 = vmul.f32 1.442695, %v526_v16 }
 0x3e1   : > { %1447 = vpow2.f32 %v527_v17 }
 0x3eb   : > { %v1448_v18 = vpop.eup %1447 }
 0x3ec   : > { %v529_v19 = vsel %vm324_vm4, %v1448_v18, 0.0 }
 0x3ed   : > { %v530_v20 = vrot.slane %v529_v19, 4 }
 0x3ef   : > { %v531_v21 = vadd.f32 %v530_v20, %v529_v19 }
 0x3f1   : > { %v532_v22 = vrot.slane %v531_v21, 2 }
 0x3f3   : > { %v533_v23 = vadd.f32 %v532_v22, %v531_v21 }
 0x3f5   : > { %v534_v24 = vrot.slane %v533_v23, 1 }
 0x3f7   : > { %v535_v25 = vadd.f32 %v534_v24, %v533_v23 }
 0x3f9   : > { %1449 = vrcp.f32 %v535_v25 }
 0x403   : > { %v1450_v26 = vpop.eup %1449 }
 0x404   : > { %v537_v27 = vmul.f32 %v1450_v26, %v1448_v18 }
 0x406   : > { %1314 = vmatmul.mubr.msk.f32.vlgmr.msra.gmra.mrb[4].mxu1 %vm352_vm5, %v537_v27  ;;  %v538_v28 = vsel %vm324_vm4, %v537_v27, 0.0 }
 0x407   : > { %539 = vadd.xlane.f32.xlu0 %v538_v28  ;;  %1371 = vmatpush3.bf16.msra.mxu1 %v1729_v6 }
 0x408   : > { %1327 = vmatprep.mubr.msk.f32.mxu1 %vm1578_vm2, %v1579_v8  ;;  %1372 = vmatprep.subr.bf16.mxu1 %v1577_v1 }
 0x494   : > { %v540_v29 = vpop.xlane.xlu0 %539 }
 0x495   : > { %v621_v30 = vadd.f32 %v540_v29, %v1726_v3  ;;  %v541_v40 = vmul.f32 0.0625, %v540_v29 }
 0x497   : > { %1451 = vrcp.f32 %v621_v30  ;;  %v542_v41 = vadd.f32 1e-06, %v541_v40 }
 0x499   : > { %1453 = vlog2.f32 %v542_v41 }
 0x4a1   : > { %v1452_v31 = vpop.eup %1451 }
 0x4a2   : > { %625 = vperm.xlu0 %1435, %v1452_v31  }
 0x4a3   : > { %v1454_v42 = vpop.eup %1453 }
 0x4a4   : > { %v544_v43 = vmul.f32 0.6931472, %v1454_v42 }
 0x4a6   : > { %v545_v45 = vadd.f32 1.0, %v544_v43 }
 0x4a8   : > { %v702_v47 = vmul.f32 1.3132617, %v545_v45 }
 0x4d9   : > { %v615_v32 = vpop.f32.mrb[4].mxu1 }
 0x4da   : > { %v1315_v33 = vpop.f32.mrb[5].mxu1  ;;  %v619_v34 = vmul.f32 1.3132617, %v615_v32 }
 0x4dc   : > { %v620_v35 = vadd.f32 %v619_v34, %v1744_v9 }
 0x521   : > { %v626_v36 = vpop.permute.xlu0 %625 }
 0x522   : > { %v628_v37 = vmul.f32 %v626_v36, %v620_v35 }
 0x524   : > { %1321 = vmatmul.mubr.msk.f32.vlgmr.msra.gmra.mrb[2].mxu0 %vm234_vm0, %v628_v37  ;;  %v703_v38 = vmul.f32 %v628_v37, %v628_v37 }
 0x525   : > { %1378 = vmatpush3.bf16.msra.mxu0 %v1729_v6  ;;  %1341 = vmatprep.mubr.msk.f32.mxu0 %vm1578_vm2, %v1579_v8 }
 0x526   : > { %v704_v39 = vsel %vm315_vm3, %v703_v38, 0.0  ;;  %1379 = vmatprep.subr.bf16.mxu0 %v1577_v1 }
 0x527   : > { %705 = vadd.xlane.f32.xlu1 %v704_v39 }
 0x5b4   : > { %v706_v44 = vpop.xlane.xlu1 %705 }
 0x5b5   : > { %v707_v46 = vmul.f32 0.5, %v706_v44 }
 0x5b7   : > { %v708_v48 = vsub.f32 %v702_v47, %v707_v46 }
 0x5b9   : > { %v709_v50 = vmul.f32 0.43229005, %v708_v48 }
 0x5f7   : > { %v698_v49 = vpop.f32.mrb[2].mxu0 }
 0x5f8   : > { %v710_v51 = vmul.f32 0.56771, %v698_v49  ;;  %v1322_v52 = vpop.f32.mrb[3].mxu0 }
 0x5fa   : > { %v711_v53 = vadd.f32 %v710_v51, %v709_v50 }
 0x5fc   : > { %v712_v54 = vsel %vm324_vm4, %v711_v53, -inf }
 0x5fd   : > { %v713_v55 = vrot.slane %v712_v54, 4 }
 0x5ff   : > { %v714_v1 = vmax.f32 %v712_v54, %v713_v55 }
 0x601   : > { %v715_v56 = vrot.slane %v714_v1, 2 }
 0x603   : > { %v716_v57 = vmax.f32 %v714_v1, %v715_v56 }
 0x605   : > { %v717_v58 = vrot.slane %v716_v57, 1 }
 0x607   : > { %v718_v59 = vmax.f32 %v716_v57, %v717_v58 }
 0x609   : > { %v719_v60 = vsub.f32 %v711_v53, %v718_v59 }
 0x60b   : > { %v720_v61 = vmul.f32 1.442695, %v719_v60 }
 0x60d   : > { %1455 = vpow2.f32 %v720_v61 }
 0x617   : > { %v1456_v62 = vpop.eup %1455 }
 0x618   : > { %v722_v63 = vsel %vm324_vm4, %v1456_v62, 0.0 }
 0x619   : > { %v723_v0 = vrot.slane %v722_v63, 4 }
 0x61b   : > { %v724_v4 = vadd.f32 %v723_v0, %v722_v63 }
 0x61d   : > { %v725_v5 = vrot.slane %v724_v4, 2 }
 0x61f   : > { %v726_v7 = vadd.f32 %v725_v5, %v724_v4 }
 0x621   : > { %v727_v10 = vrot.slane %v726_v7, 1 }
 0x623   : > { %v728_v11 = vadd.f32 %v727_v10, %v726_v7 }
 0x625   : > { %1457 = vrcp.f32 %v728_v11 }
 0x62f   : > { %v1458_v12 = vpop.eup %1457 }
 0x630   : > { %v730_v13 = vmul.f32 %v1458_v12, %v1456_v62 }
 0x632   : > { %1328 = vmatmul.mubr.msk.f32.vlgmr.msra.gmra.mrb[6].mxu1 %vm352_vm5, %v730_v13  ;;  %v731_v14 = vsel %vm324_vm4, %v730_v13, 0.0 }
 0x633   : > { %732 = vadd.xlane.f32.xlu0 %v731_v14  ;;  %1375 = vmatpush3.bf16.xpose.msk.msra.mxu1 %vm1722_vm1, %v1729_v6 }
 0x634   : > { %1334 = vmatprep.mubr.msk.f32.mxu1 %vm1578_vm2, %v1579_v8 }
 0x6c0   : > { %v733_v15 = vpop.xlane.xlu0 %732 }
 0x6c1   : > { %v814_v16 = vadd.f32 %v733_v15, %v1726_v3  ;;  %v734_v26 = vmul.f32 0.0625, %v733_v15 }
 0x6c3   : > { %1459 = vrcp.f32 %v814_v16  ;;  %v735_v27 = vadd.f32 1e-06, %v734_v26 }
 0x6c5   : > { %1461 = vlog2.f32 %v735_v27 }
 0x6cd   : > { %v1460_v17 = vpop.eup %1459 }
 0x6ce   : > { %818 = vperm.xlu1 %1436, %v1460_v17  }
 0x6cf   : > { %v1462_v28 = vpop.eup %1461 }
 0x6d0   : > { %v737_v29 = vmul.f32 0.6931472, %v1462_v28 }
 0x6d2   : > { %v738_v31 = vadd.f32 1.0, %v737_v29 }
 0x6d4   : > { %v895_v33 = vmul.f32 1.3132617, %v738_v31 }
 0x705   : > { %v808_v18 = vpop.f32.mrb[6].mxu1 }
 0x706   : > { %v1329_v19 = vpop.f32.mrb[7].mxu1  ;;  %v812_v20 = vmul.f32 1.3132617, %v808_v18 }
 0x708   : > { %v813_v21 = vadd.f32 %v812_v20, %v1744_v9 }
 0x74d   : > { %v819_v22 = vpop.permute.xlu1 %818 }
 0x74e   : > { %v821_v23 = vmul.f32 %v819_v22, %v813_v21 }
 0x750   : > { %1335 = vmatmul.mubr.msk.f32.vlgmr.msra.gmra.mrb[8].mxu1 %vm234_vm0, %v821_v23  ;;  %v896_v24 = vmul.f32 %v821_v23, %v821_v23 }
 0x752   : > { %v897_v25 = vsel %vm315_vm3, %v896_v24, 0.0 }
 0x753   : > { %898 = vadd.xlane.f32.xlu1 %v897_v25 }
 0x7e0   : > { %v899_v30 = vpop.xlane.xlu1 %898 }
 0x7e1   : > { %v900_v32 = vmul.f32 0.5, %v899_v30 }
 0x7e3   : > { %v901_v34 = vsub.f32 %v895_v33, %v900_v32 }
 0x7e5   : > { %v902_v36 = vmul.f32 0.43229005, %v901_v34 }
 0x823   : > { %v891_v35 = vpop.f32.mrb[8].mxu1 }
 0x824   : > { %v903_v37 = vmul.f32 0.56771, %v891_v35  ;;  %v1336_v38 = vpop.f32.mrb[9].mxu1 }
 0x826   : > { %v904_v39 = vadd.f32 %v903_v37, %v902_v36 }
 0x828   : > { %v905_v40 = vsel %vm324_vm4, %v904_v39, -inf }
 0x829   : > { %v906_v41 = vrot.slane %v905_v40, 4 }
 0x82b   : > { %v907_v42 = vmax.f32 %v905_v40, %v906_v41 }
 0x82d   : > { %v908_v43 = vrot.slane %v907_v42, 2 }
 0x82f   : > { %v909_v44 = vmax.f32 %v907_v42, %v908_v43 }
 0x831   : > { %v910_v45 = vrot.slane %v909_v44, 1 }
 0x833   : > { %v911_v46 = vmax.f32 %v909_v44, %v910_v45 }
 0x835   : > { %v912_v47 = vsub.f32 %v904_v39, %v911_v46 }
 0x837   : > { %v913_v48 = vmul.f32 1.442695, %v912_v47 }
 0x839   : > { %1463 = vpow2.f32 %v913_v48 }
 0x843   : > { %v1464_v49 = vpop.eup %1463 }
 0x844   : > { %v915_v50 = vsel %vm324_vm4, %v1464_v49, 0.0 }
 0x845   : > { %v916_v51 = vrot.slane %v915_v50, 4 }
 0x847   : > { %v917_v52 = vadd.f32 %v916_v51, %v915_v50 }
 0x849   : > { %v918_v53 = vrot.slane %v917_v52, 2 }
 0x84b   : > { %v919_v54 = vadd.f32 %v918_v53, %v917_v52 }
 0x84d   : > { %v920_v55 = vrot.slane %v919_v54, 1 }
 0x84f   : > { %v921_v1 = vadd.f32 %v920_v55, %v919_v54 }
 0x851   : > { %1465 = vrcp.f32 %v921_v1 }
 0x85b   : > { %v1466_v56 = vpop.eup %1465 }
 0x85c   : > { %v923_v57 = vmul.f32 %v1466_v56, %v1464_v49 }
 0x85e   : > { %1342 = vmatmul.mubr.msk.f32.vlgmr.msra.gmra.mrb[4].mxu0 %vm352_vm5, %v923_v57  ;;  %v924_v58 = vsel %vm324_vm4, %v923_v57, 0.0 }
 0x85f   : > { %925 = vadd.xlane.f32.xlu0 %v924_v58  ;;  %1382 = vmatpush3.bf16.xpose.msk.msra.mxu0 %vm1722_vm1, %v1729_v6 }
 0x860   : > { %1348 = vmatprep.mubr.msk.f32.mxu0 %vm1578_vm2, %v1579_v8 }
 0x8ec   : > { %v926_v59 = vpop.xlane.xlu0 %925 }
 0x8ed   : > { %v1007_v60 = vadd.f32 %v926_v59, %v1726_v3  ;;  %v927_v8 = vmul.f32 0.0625, %v926_v59 }
 0x8ef   : > { %1467 = vrcp.f32 %v1007_v60  ;;  %v928_v10 = vadd.f32 1e-06, %v927_v8 }
 0x8f1   : > { %1469 = vlog2.f32 %v928_v10 }
 0x8f9   : > { %v1468_v61 = vpop.eup %1467 }
 0x8fa   : > { %1011 = vperm.xlu0 %1435, %v1468_v61  }
 0x8fb   : > { %v1470_v3 = vpop.eup %1469 }
 0x8fc   : > { %v930_v11 = vmul.f32 0.6931472, %v1470_v3 }
 0x8fe   : > { %v931_v13 = vadd.f32 1.0, %v930_v11 }
 0x900   : > { %v1088_v15 = vmul.f32 1.3132617, %v931_v13 }
 0x931   : > { %v1001_v62 = vpop.f32.mrb[4].mxu0 }
 0x932   : > { %v1343_v63 = vpop.f32.mrb[5].mxu0  ;;  %v1005_v0 = vmul.f32 1.3132617, %v1001_v62 }
 0x934   : > { %v1006_v4 = vadd.f32 %v1005_v0, %v1744_v9 }
 0x979   : > { %v1012_v5 = vpop.permute.xlu0 %1011 }
 0x97a   : > { %v1014_v7 = vmul.f32 %v1012_v5, %v1006_v4 }
 0x97c   : > { %1349 = vmatmul.mubr.msk.f32.vlgmr.msra.gmra.mrb[6].mxu0 %vm234_vm0, %v1014_v7  ;;  %v1089_v2 = vmul.f32 %v1014_v7, %v1014_v7 }
 0x97e   : > { %v1090_v6 = vsel %vm315_vm3, %v1089_v2, 0.0 }
 0x97f   : > { %1091 = vadd.xlane.f32.xlu1 %v1090_v6 }
 0xa0c   : > { %v1092_v12 = vpop.xlane.xlu1 %1091 }
 0xa0d   : > { %v1093_v14 = vmul.f32 0.5, %v1092_v12 }
 0xa0f   : > { %v1094_v16 = vsub.f32 %v1088_v15, %v1093_v14 }
 0xa11   : > { %v1095_v9 = vmul.f32 0.43229005, %v1094_v16 }
 0xa4f   : > { %v1084_v17 = vpop.f32.mrb[6].mxu0 }
 0xa50   : > { %v1096_v18 = vmul.f32 0.56771, %v1084_v17  ;;  %v1350_v19 = vpop.f32.mrb[7].mxu0 }
 0xa52   : > { %v1097_v20 = vadd.f32 %v1096_v18, %v1095_v9 }
 0xa54   : > { %v1098_v21 = vsel %vm324_vm4, %v1097_v20, -inf }
 0xa55   : > { %v1099_v22 = vrot.slane %v1098_v21, 4 }
 0xa57   : > { %v1100_v23 = vmax.f32 %v1098_v21, %v1099_v22 }
 0xa59   : > { %v1101_v24 = vrot.slane %v1100_v23, 2 }
 0xa5b   : > { %v1102_v25 = vmax.f32 %v1100_v23, %v1101_v24 }
 0xa5d   : > { %v1103_v26 = vrot.slane %v1102_v25, 1 }
 0xa5f   : > { %v1104_v27 = vmax.f32 %v1102_v25, %v1103_v26 }
 0xa61   : > { %v1105_v28 = vsub.f32 %v1097_v20, %v1104_v27 }
 0xa63   : > { %v1106_v29 = vmul.f32 1.442695, %v1105_v28 }
 0xa65   : > { %1471 = vpow2.f32 %v1106_v29 }
 0xa6f   : > { %v1472_v30 = vpop.eup %1471 }
 0xa70   : > { %v1108_v31 = vsel %vm324_vm4, %v1472_v30, 0.0 }
 0xa71   : > { %v1109_v32 = vrot.slane %v1108_v31, 4 }
 0xa73   : > { %v1110_v33 = vadd.f32 %v1109_v32, %v1108_v31 }
 0xa75   : > { %v1111_v34 = vrot.slane %v1110_v33, 2 }
 0xa77   : > { %v1112_v35 = vadd.f32 %v1111_v34, %v1110_v33 }
 0xa79   : > { %v1113_v36 = vrot.slane %v1112_v35, 1 }
 0xa7b   : > { %v1114_v37 = vadd.f32 %v1113_v36, %v1112_v35 }
 0xa7d   : > { %1473 = vrcp.f32 %v1114_v37 }
 0xa87   : > { %v1474_v38 = vpop.eup %1473 }
 0xa88   : > { %v1116_v39 = vmul.f32 %v1474_v38, %v1472_v30 }
 0xa8a   : > { %1117 = vst.msk [vmem:[%s214_s27] sm:$0xf] %vm324_vm4, %v1116_v39 }
 0xa8b   : > { %1518 = shalt.err (!%p1515_p4)
}
 0xa8c   : > { %s1519_s5 = scalar_lea.hbm %s1822_s9, 64  ;;  %s1523_s17 = scalar_lea.hbm %s1870_s3, 128 }
 0xa8d   : > { %p1520_p5 = scmp.ne.s32.totalorder %s1822_s9, %s1519_s5  ;;  %p1524_p1 = scmp.lt.u32.totalorder %s1822_s9, %s1870_s3 }
 0xa8e   : > { %p1525_p3 = scmp.lt.u32.totalorder %s1523_s17, %s1519_s5  ;;  %p1527_p6 = scmp.lt.u32.totalorder %s1519_s5, %s1822_s9 }
 0xa8f   : > { %p1521_p7 = pnand %p1520_p5, %p1879_p12 }
 0xa90   : > { %p1526_p11 = por %p1525_p3, %p1524_p1 }
 0xa91   : > { %p1522_p9 = pneg %p1521_p7 }
 0xa92   : > { %p1528_p13 = por %p1527_p6, %p1526_p11 }
 0xa94   : > { %p1529_p8 = pnand %p1528_p13, %p1522_p9 }
 0xa96   : > { %1532 = shalt.err (!%p1529_p8)
}
 0xa97   : > { %1385 = dma.vmem_to_hbm [thread:$0]  (%p1879_p12), %s1824_s28, 64, %s1822_s9, %s1119_s10  }
 0xa98 PF: > { %s1144_s20 = sand.u32 1, %s1559_s12   ;;  %p1880_p10 = scmp.ne.s32.totalorder %s1875_s25, 0 }
 0xa99   : > { %p1881_p0 = scmp.ge.s32.totalorder %s1571_s15, 2  ;;  %s1145_s22 = scalar_lea.sflag [#allocation4], %s1144_s20 }
 0xa9b   : > { %p1392_p2 = pnand %p1881_p0, %p1880_p10 }
 0xa9d   : > { %1554 = dma.done.wait (!%p1392_p2), %s1145_s22, 64  }
 0xa9e   : > { %1556 = vsyncadd (!%p1392_p2), %s1145_s22, 4294967232  ;;  %p16_p4 = scmp.ge.s32.totalorder %s1626_s18, 4   ;;  %s1882_s12 = smov %s1563_s13 }
 0xa9f   : > { %s1883_s13 = smov %s1567_s14  ;;  %s1884_s14 = smov %s1638_s21 }
 0xaa0   : > { %s1885_s15 = smov %s1626_s18  ;;  %18 = sbr.rel (!%p16_p4) target bundleno = 5 (0x5), region = 83 }
 0xaa7   :  { %1150 = vsyncpa [#allocation3], 1 }
 0xaa8   :  { %1152 = vsyncpa [#allocation3 + $0x1], 1 }
 0xaa9   :  { %1153 = vsyncpa [#allocation4], 1 }
 0xaaa   :  { %1155 = vsyncpa [#allocation4 + $0x1], 1 }

</bundles_post_ra>
